<compile_context>
chip_gen: v6e
topology: v6e:2x2x1
jax: 0.10.0
libtpu: 0.0.40
codegen_flags: <defaults>
</compile_context>

<pallas_src>
import functools

import jax
import jax.numpy as jnp
from jax import lax
from jax.experimental import pallas as pl
from jax.experimental.pallas import tpu as pltpu


def _dice_sums_kernel(x_ref, t_ref, out_ref, *, strip, last_rem, num_tiles,
                      n_inner, fuse_softmax):
    # x_ref: (C, TILE) scores for one batch element / lane tile
    # t_ref: (1, TILE) integer class labels (caller dtype, cast per-strip)
    # out_ref: (C, 3) resident accumulator [intersect, sum(score^2), sum(onehot)]
    C, tile = x_ref.shape
    n = pl.program_id(2)

    @pl.when(n == 0)
    def _init():
        out_ref[...] = jnp.zeros_like(out_ref)

    def strip_sums(x, t):
        # x: (C, S) float32 scores, t: (1, S) int32 labels -> three (C, 1) sums
        if fuse_softmax:
            m = jnp.max(x, axis=0, keepdims=True)
            e = jnp.exp(x - m)
            denom = jnp.sum(e, axis=0, keepdims=True)
            inv = pl.reciprocal(denom, approx=True)     # EUP slot
            inv = inv * (2.0 - denom * inv)             # one Newton step -> ~f32 exact
            x = e * inv
        cls = lax.broadcasted_iota(jnp.int32, x.shape, 0)
        match = t == cls                                # bool one-hot(target)
        inter = jnp.sum(jnp.where(match, x, 0.0), axis=1, keepdims=True)
        zsum = jnp.sum(x * x, axis=1, keepdims=True)
        ysum = jnp.sum(jnp.where(match, 1.0, 0.0), axis=1, keepdims=True)
        return inter, zsum, ysum

    def accumulate(n_full, tail):
        # n_full / tail are STATIC: no elementwise masking anywhere.
        zero = jnp.zeros((C, 1), jnp.float32)
        acc = (zero, zero, zero)

        def body(i, carry):
            off = pl.multiple_of(i * strip, strip)
            x = x_ref[:, pl.ds(off, strip)].astype(jnp.float32)
            t = t_ref[:, pl.ds(off, strip)].astype(jnp.int32)
            di, dz, dy = strip_sums(x, t)
            return carry[0] + di, carry[1] + dz, carry[2] + dy

        if n_full > 0:
            unroll = True if n_full <= 8 else 8
            acc = lax.fori_loop(0, n_full, body, acc, unroll=unroll)
        if tail > 0:  # static-size tail strip
            lo = n_full * strip
            x = x_ref[:, lo:lo + tail].astype(jnp.float32)
            t = t_ref[:, lo:lo + tail].astype(jnp.int32)
            di, dz, dy = strip_sums(x, t)
            acc = (acc[0] + di, acc[1] + dz, acc[2] + dy)

        inter, zsum, ysum = acc
        out_ref[:, 0:1] += inter
        out_ref[:, 1:2] += zsum
        out_ref[:, 2:3] += ysum

    if last_rem == tile:
        # HW divides evenly (or single full-width tile): one fast path.
        accumulate(tile // strip, tile % strip)
    else:
        logical_tile = pl.program_id(0) * n_inner + n
        is_last = logical_tile == num_tiles - 1

        @pl.when(jnp.logical_not(is_last))
        def _full():
            accumulate(tile // strip, tile % strip)

        @pl.when(is_last)
        def _ragged():
            # Only the valid last_rem lanes of the overhanging block are read.
            accumulate(last_rem // strip, last_rem % strip)


def dice_loss(inputs, target, n_classes, weight=None, softmax=False,
              tile_hw=128 * 1024):
    """Pallas implementation of DiceLoss.forward.

    inputs: (B, C, H, W) float scores; target: (B, 1, H, W) integer labels
    (int8/uint8/int32 all accepted end-to-end, never upcast in the wrapper).
    """
    B, C, H, W = inputs.shape
    assert C == n_classes, "channel dim must equal n_classes"
    if weight is None:
        weight = [1.0] * n_classes
    weight = jnp.asarray(weight, jnp.float32)

    HW = H * W
    x = inputs.reshape(B, C, HW)   # free view: no extra HBM pass
    t = target.reshape(B, 1, HW)   # keep caller's integer dtype

    x_item = jnp.dtype(x.dtype).itemsize
    t_item = jnp.dtype(t.dtype).itemsize

    # In-kernel compute strip: ~8K f32 elements so temporaries stay in vregs.
    strip = max(128, min(2048, ((8192 // max(C, 1)) // 128) * 128))

    # Generation-aware VMEM budget (v7x: 64 MiB, v5e/v6e: 128 MiB).
    try:
        vmem_cap = int(pltpu.get_tpu_info().vmem_capacity_bytes)
    except Exception:
        vmem_cap = 64 << 20
    in_budget = int(vmem_cap * 0.4)                    # double-buffered inputs
    per_lane = 2 * (C * x_item + t_item)
    max_tile = max(strip, (in_budget // per_lane) // 128 * 128)
    tile_cap = max(128, min(tile_hw, max_tile))

    if HW <= tile_cap:
        tile_hw = HW                                   # single full-width block
        num_tiles = 1
    else:
        if tile_cap < strip:
            strip = max(128, (tile_cap // 128) * 128)
        tile_hw = max(strip, (tile_cap // strip) * strip)
        num_tiles = pl.cdiv(HW, tile_hw)
    strip = min(strip, tile_hw)
    last_rem = HW - (num_tiles - 1) * tile_hw          # == tile_hw iff HW divides

    # Split the reduction axis for v7x's two TensorCores only when the batch
    # axis can't feed them and no duplicated tile would be created.
    P = 2 if (B < 2 and num_tiles >= 2 and num_tiles % 2 == 0) else 1
    n_inner = num_tiles // P

    vmem_est = (2 * tile_hw * (C * x_item + t_item)    # double-buffered inputs
                + 16 * C * strip * 4                   # strip-sized temporaries
                + (2 << 20))                           # accumulators + headroom
    vmem_limit = int(min(max(vmem_est, 16 << 20), vmem_cap // 2))

    kernel = functools.partial(
        _dice_sums_kernel, strip=strip, last_rem=last_rem,
        num_tiles=num_tiles, n_inner=n_inner, fuse_softmax=softmax)

    in_map = lambda p, b, n: (b, 0, p * n_inner + n)
    out_map = lambda p, b, n: (p, b, 0, 0)

    sums = pl.pallas_call(
        kernel,
        out_shape=jax.ShapeDtypeStruct((P, B, C, 3), jnp.float32),
        grid_spec=pltpu.PrefetchScalarGridSpec(
            num_scalar_prefetch=0,
            grid=(P, B, n_inner),
            in_specs=[
                pl.BlockSpec((None, C, tile_hw), in_map),
                pl.BlockSpec((None, 1, tile_hw), in_map),
            ],
            out_specs=pl.BlockSpec((None, None, C, 3), out_map),
        ),
        compiler_params=pltpu.CompilerParams(
            dimension_semantics=("parallel", "parallel", "arbitrary"),
            vmem_limit_bytes=vmem_limit,
        ),
    )(x, t)

    # Tiny fused epilogue: reduce the (P, B) partials and form the dice loss.
    sums = jnp.sum(sums, axis=(0, 1))                  # (C, 3)
    smooth = 1e-5
    # _dice_loss returns the NEGATED dice coefficient; forward averages 1..C-1.
    dice = -(2.0 * sums[:, 0] + smooth) / (sums[:, 1] + sums[:, 2] + smooth)
    return jnp.sum(dice[1:] * weight[1:]) / (n_classes - 1)


def dice_loss_ref(inputs, target, n_classes, weight=None, softmax=False):
    """Pure-JAX reference mirroring the PyTorch module exactly."""
    if softmax:
        inputs = jax.nn.softmax(inputs, axis=1)
    if weight is None:
        weight = [1.0] * n_classes
    tgt = jax.nn.one_hot(target[:, 0], n_classes, dtype=jnp.float32)  # (B,H,W,C)
    tgt = jnp.transpose(tgt, (0, 3, 1, 2))                            # (B,C,H,W)
    smooth = 1e-5
    loss = 0.0
    for i in range(1, n_classes):
        s = inputs[:, i]
        ti = tgt[:, i]
        intersect = jnp.sum(s * ti)
        y_sum = jnp.sum(ti * ti)
        z_sum = jnp.sum(s * s)
        d = -(2.0 * intersect + smooth) / (z_sum + y_sum + smooth)
        loss = loss + d * weight[i]
    return loss / (n_classes - 1)


if __name__ == "__main__":
    key = jax.random.PRNGKey(0)
    ks = jax.random.split(key, 8)

    def check(got, ref):
        assert jnp.allclose(got, ref, rtol=1e-4, atol=1e-6), (got, ref)

    # Case 1: small NCHW input, fused softmax, single full-width tile.
    B, C, H, W = 2, 4, 16, 16
    x1 = jax.random.normal(ks[0], (B, C, H, W), dtype=jnp.float32)
    t1 = jax.random.randint(ks[1], (B, 1, H, W), 0, C, dtype=jnp.int32)
    l1 = jax.block_until_ready(dice_loss(x1, t1, n_classes=C, softmax=True))
    check(l1, dice_loss_ref(x1, t1, n_classes=C, softmax=True))

    # Case 2: multi-tile with a ragged last tile -> static-size tail strip and
    # the pl.when fast/ragged paths (B=2 keeps P=1, megacore shards over B).
    B, C, H, W = 2, 4, 24, 24
    x2 = jax.random.normal(ks[2], (B, C, H, W), dtype=jnp.float32)
    t2 = jax.random.randint(ks[3], (B, 1, H, W), 0, C, dtype=jnp.int32)
    l2 = jax.block_until_ready(
        dice_loss(x2, t2, n_classes=C, softmax=False, tile_hw=256))
    check(l2, dice_loss_ref(x2, t2, n_classes=C, softmax=False))

    # Case 3: B=1 with an even tile count -> P=2 reduction split (v7x path),
    # no duplicated tiles, fused softmax with approx reciprocal + Newton.
    B, C, H, W = 1, 4, 32, 32
    x3 = jax.random.normal(ks[4], (B, C, H, W), dtype=jnp.float32)
    t3 = jax.random.randint(ks[5], (B, 1, H, W), 0, C, dtype=jnp.int32)
    l3 = jax.block_until_ready(
        dice_loss(x3, t3, n_classes=C, softmax=True, tile_hw=256))
    check(l3, dice_loss_ref(x3, t3, n_classes=C, softmax=True))

    # Case 4: single large tile with multiple in-kernel strips + static tail.
    B, C, H, W = 1, 4, 50, 50
    x4 = jax.random.normal(ks[6], (B, C, H, W), dtype=jnp.float32)
    t4 = jax.random.randint(ks[7], (B, 1, H, W), 0, C, dtype=jnp.int32)
    l4 = jax.block_until_ready(dice_loss(x4, t4, n_classes=C, softmax=True))
    check(l4, dice_loss_ref(x4, t4, n_classes=C, softmax=True))

    print("KERNEL_OK")
</pallas_src>

<mosaic_0001>
module attributes {stable_mosaic.version = 11 : i64} {
  func.func @_dice_sums_kernel(%arg0: i32, %arg1: i32, %arg2: i32, %arg3: memref<1x4x256xf32, #tpu.memory_space<vmem>>, %arg4: memref<1x1x256xi32, #tpu.memory_space<vmem>>, %arg5: memref<1x1x4x3xf32, #tpu.memory_space<vmem>>) attributes {dimension_semantics = [#tpu.dimension_semantics<parallel>, #tpu.dimension_semantics<parallel>, #tpu.dimension_semantics<arbitrary>], iteration_bounds = array<i64: 1, 2, 1>, scalar_prefetch = 0 : i64, scratch_operands = 0 : i64, tpu.core_type = #tpu.core_type<tc>, window_params = [{transform_indices = @transform_0, window_bounds = array<i64: 1, 4, 256>}, {transform_indices = @transform_1, window_bounds = array<i64: 1, 1, 256>}, {transform_indices = @transform_2, window_bounds = array<i64: 1, 1, 4, 3>}]} {
    %c0_i32 = arith.constant 0 : i32
    %0 = arith.cmpi eq, %arg2, %c0_i32 : i32
    %1 = arith.extui %0 : i1 to i32
    %c0_i32_0 = arith.constant 0 : i32
    %2 = arith.cmpi ne, %1, %c0_i32_0 : i32
    scf.if %2 {
      %cst_36 = arith.constant 0.000000e+00 : f32
      %62 = vector.broadcast %cst_36 : f32 to vector<4x3xf32>
      %c0_37 = arith.constant 0 : index
      %c0_38 = arith.constant 0 : index
      %c0_39 = arith.constant 0 : index
      %c0_40 = arith.constant 0 : index
      %63 = vector.load %arg5[%c0_37, %c0_38, %c0_39, %c0_40] : memref<1x1x4x3xf32, #tpu.memory_space<vmem>>, vector<1x1x4x3xf32>
      %64 = vector.shape_cast %63 : vector<1x1x4x3xf32> to vector<4x3xf32>
      %65 = vector.shape_cast %62 : vector<4x3xf32> to vector<1x1x4x3xf32>
      tpu.vector_store %arg5[%c0_37, %c0_38, %c0_39, %c0_40], %65 {strides = array<i32>} : memref<1x1x4x3xf32, #tpu.memory_space<vmem>>, vector<1x1x4x3xf32>,
    } else {
    }
    %cst = arith.constant 0.000000e+00 : f32
    %3 = vector.broadcast %cst : f32 to vector<4x1xf32>
    %c0_i32_1 = arith.constant 0 : i32
    %c256_i32 = arith.constant 256 : i32
    %4 = arith.muli %c0_i32_1, %c256_i32 : i32
    %5 = tpu.assume_multiple %4, 256 : i32
    %c0 = arith.constant 0 : index
    %c0_2 = arith.constant 0 : index
    %6 = arith.index_cast %5 : i32 to index
    %7 = vector.load %arg3[%c0, %c0_2, %6] : memref<1x4x256xf32, #tpu.memory_space<vmem>>, vector<1x4x256xf32>
    %8 = vector.shape_cast %7 : vector<1x4x256xf32> to vector<4x256xf32>
    %c0_3 = arith.constant 0 : index
    %c0_4 = arith.constant 0 : index
    %9 = arith.index_cast %5 : i32 to index
    %10 = vector.load %arg4[%c0_3, %c0_4, %9] : memref<1x1x256xi32, #tpu.memory_space<vmem>>, vector<1x1x256xi32>
    %11 = vector.shape_cast %10 : vector<1x1x256xi32> to vector<1x256xi32>
    %cst_5 = arith.constant dense<0xFF800000> : vector<256xf32>
    %12 = vector.multi_reduction <maximumf>, %8, %cst_5 [0] : vector<4x256xf32> to vector<256xf32>
    %13 = vector.shape_cast %12 : vector<256xf32> to vector<1x256xf32>
    %14 = vector.broadcast %13 : vector<1x256xf32> to vector<4x256xf32>
    %15 = arith.subf %8, %14 : vector<4x256xf32>
    %16 = math.exp %15 : vector<4x256xf32>
    %cst_6 = arith.constant dense<0.000000e+00> : vector<256xf32>
    %17 = vector.multi_reduction <add>, %16, %cst_6 [0] : vector<4x256xf32> to vector<256xf32>
    %18 = vector.shape_cast %17 : vector<256xf32> to vector<1x256xf32>
    %19 = tpu.reciprocal %18 {approx = true} : vector<1x256xf32> -> vector<1x256xf32>
    %20 = arith.mulf %18, %19 : vector<1x256xf32>
    %cst_7 = arith.constant 2.000000e+00 : f32
    %21 = vector.broadcast %cst_7 : f32 to vector<1x256xf32>
    %22 = arith.subf %21, %20 : vector<1x256xf32>
    %23 = arith.mulf %19, %22 : vector<1x256xf32>
    %24 = vector.broadcast %23 : vector<1x256xf32> to vector<4x256xf32>
    %25 = arith.mulf %16, %24 : vector<4x256xf32>
    %26 = tpu.iota {dimensions = array<i32: 0>} : vector<4x256xi32>
    %27 = vector.broadcast %11 : vector<1x256xi32> to vector<4x256xi32>
    %28 = arith.cmpi eq, %27, %26 : vector<4x256xi32>
    %cst_8 = arith.constant 0.000000e+00 : f32
    %29 = vector.broadcast %cst_8 : f32 to vector<4x256xf32>
    %30 = arith.select %28, %25, %29 : vector<4x256xi1>, vector<4x256xf32>
    %cst_9 = arith.constant dense<0.000000e+00> : vector<4xf32>
    %31 = vector.multi_reduction <add>, %30, %cst_9 [1] : vector<4x256xf32> to vector<4xf32>
    %32 = vector.shape_cast %31 : vector<4xf32> to vector<4x1xf32>
    %33 = arith.mulf %25, %25 : vector<4x256xf32>
    %cst_10 = arith.constant dense<0.000000e+00> : vector<4xf32>
    %34 = vector.multi_reduction <add>, %33, %cst_10 [1] : vector<4x256xf32> to vector<4xf32>
    %35 = vector.shape_cast %34 : vector<4xf32> to vector<4x1xf32>
    %cst_11 = arith.constant 1.000000e+00 : f32
    %cst_12 = arith.constant 0.000000e+00 : f32
    %36 = vector.broadcast %cst_11 : f32 to vector<4x256xf32>
    %37 = vector.broadcast %cst_12 : f32 to vector<4x256xf32>
    %38 = arith.select %28, %36, %37 : vector<4x256xi1>, vector<4x256xf32>
    %cst_13 = arith.constant dense<0.000000e+00> : vector<4xf32>
    %39 = vector.multi_reduction <add>, %38, %cst_13 [1] : vector<4x256xf32> to vector<4xf32>
    %40 = vector.shape_cast %39 : vector<4xf32> to vector<4x1xf32>
    %41 = arith.addf %3, %32 : vector<4x1xf32>
    %42 = arith.addf %3, %35 : vector<4x1xf32>
    %43 = arith.addf %3, %40 : vector<4x1xf32>
    %c1_i32 = arith.constant 1 : i32
    %c0_14 = arith.constant 0 : index
    %c0_15 = arith.constant 0 : index
    %c0_16 = arith.constant 0 : index
    %c0_17 = arith.constant 0 : index
    %44 = vector.load %arg5[%c0_14, %c0_15, %c0_16, %c0_17] : memref<1x1x4x3xf32, #tpu.memory_space<vmem>>, vector<1x1x4x1xf32>
    %45 = vector.shape_cast %44 : vector<1x1x4x1xf32> to vector<4x1xf32>
    %46 = arith.addf %45, %41 : vector<4x1xf32>
    %c0_18 = arith.constant 0 : index
    %c0_19 = arith.constant 0 : index
    %c0_20 = arith.constant 0 : index
    %c0_21 = arith.constant 0 : index
    %47 = vector.load %arg5[%c0_18, %c0_19, %c0_20, %c0_21] : memref<1x1x4x3xf32, #tpu.memory_space<vmem>>, vector<1x1x4x1xf32>
    %48 = vector.shape_cast %47 : vector<1x1x4x1xf32> to vector<4x1xf32>
    %49 = vector.shape_cast %46 : vector<4x1xf32> to vector<1x1x4x1xf32>
    tpu.vector_store %arg5[%c0_18, %c0_19, %c0_20, %c0_21], %49 {strides = array<i32>} : memref<1x1x4x3xf32, #tpu.memory_space<vmem>>, vector<1x1x4x1xf32>,
    %c0_22 = arith.constant 0 : index
    %c0_23 = arith.constant 0 : index
    %c0_24 = arith.constant 0 : index
    %c1 = arith.constant 1 : index
    %50 = vector.load %arg5[%c0_22, %c0_23, %c0_24, %c1] : memref<1x1x4x3xf32, #tpu.memory_space<vmem>>, vector<1x1x4x1xf32>
    %51 = vector.shape_cast %50 : vector<1x1x4x1xf32> to vector<4x1xf32>
    %52 = arith.addf %51, %42 : vector<4x1xf32>
    %c0_25 = arith.constant 0 : index
    %c0_26 = arith.constant 0 : index
    %c0_27 = arith.constant 0 : index
    %c1_28 = arith.constant 1 : index
    %53 = vector.load %arg5[%c0_25, %c0_26, %c0_27, %c1_28] : memref<1x1x4x3xf32, #tpu.memory_space<vmem>>, vector<1x1x4x1xf32>
    %54 = vector.shape_cast %53 : vector<1x1x4x1xf32> to vector<4x1xf32>
    %55 = vector.shape_cast %52 : vector<4x1xf32> to vector<1x1x4x1xf32>
    tpu.vector_store %arg5[%c0_25, %c0_26, %c0_27, %c1_28], %55 {strides = array<i32>} : memref<1x1x4x3xf32, #tpu.memory_space<vmem>>, vector<1x1x4x1xf32>,
    %c0_29 = arith.constant 0 : index
    %c0_30 = arith.constant 0 : index
    %c0_31 = arith.constant 0 : index
    %c2 = arith.constant 2 : index
    %56 = vector.load %arg5[%c0_29, %c0_30, %c0_31, %c2] : memref<1x1x4x3xf32, #tpu.memory_space<vmem>>, vector<1x1x4x1xf32>
    %57 = vector.shape_cast %56 : vector<1x1x4x1xf32> to vector<4x1xf32>
    %58 = arith.addf %57, %43 : vector<4x1xf32>
    %c0_32 = arith.constant 0 : index
    %c0_33 = arith.constant 0 : index
    %c0_34 = arith.constant 0 : index
    %c2_35 = arith.constant 2 : index
    %59 = vector.load %arg5[%c0_32, %c0_33, %c0_34, %c2_35] : memref<1x1x4x3xf32, #tpu.memory_space<vmem>>, vector<1x1x4x1xf32>
    %60 = vector.shape_cast %59 : vector<1x1x4x1xf32> to vector<4x1xf32>
    %61 = vector.shape_cast %58 : vector<4x1xf32> to vector<1x1x4x1xf32>
    tpu.vector_store %arg5[%c0_32, %c0_33, %c0_34, %c2_35], %61 {strides = array<i32>} : memref<1x1x4x3xf32, #tpu.memory_space<vmem>>, vector<1x1x4x1xf32>,
    return
  }
  func.func @transform_0(%arg0: i32, %arg1: i32, %arg2: i32) -> (i32, i32, i32) {
    %c1_i32 = arith.constant 1 : i32
    %0 = arith.muli %arg0, %c1_i32 : i32
    %1 = arith.addi %0, %arg2 : i32
    %c0_i32 = arith.constant 0 : i32
    %c0_i32_0 = arith.constant 0 : i32
    return %arg1, %c0_i32, %1 : i32, i32, i32
  }
  func.func @transform_1(%arg0: i32, %arg1: i32, %arg2: i32) -> (i32, i32, i32) {
    %c1_i32 = arith.constant 1 : i32
    %0 = arith.muli %arg0, %c1_i32 : i32
    %1 = arith.addi %0, %arg2 : i32
    %c0_i32 = arith.constant 0 : i32
    %c0_i32_0 = arith.constant 0 : i32
    return %arg1, %c0_i32, %1 : i32, i32, i32
  }
  func.func @transform_2(%arg0: i32, %arg1: i32, %arg2: i32) -> (i32, i32, i32, i32) {
    %c0_i32 = arith.constant 0 : i32
    %c0_i32_0 = arith.constant 0 : i32
    %c0_i32_1 = arith.constant 0 : i32
    return %arg0, %arg1, %c0_i32, %c0_i32_0 : i32, i32, i32, i32
  }
}

</mosaic_0001>

<bundles_post_ra>
// kernel: tpu_custom_call.1
= control target key start
LH: loop header
LB: loop body
LE: loop exit
PB: predicated region body
PF: predicated region fallthrough
CT: control target
= control target key end

     0   :  { %7 = vsyncpa [#allocation3], 0  ;;  %s861_s0 = inlined_call_operand.hbm [shape: f32[2,4,256], index: 0, kind: input, shape index: {}]   ;;  %s862_s1 = inlined_call_operand.hbm [shape: s32[2,1,256], index: 1, kind: input, shape index: {}]   ;;  %s863_s2 = inlined_call_operand.vmem [shape: f32[1,2,4,3], index: 2, kind: output, shape index: {}]  }
   0x1   :  { %9 = vsyncpa [#allocation3 + $0x1], 0 }
   0x2   :  { %10 = vsyncpa [#allocation5], 0 }
   0x3   :  { %12 = vsyncpa [#allocation5 + $0x1], 0  ;;  %s700_s9 = smov 0   ;;  %s702_s10 = smov 0  }
   0x4   :  { %s704_s11 = smov 0   ;;  %s706_s12 = smov 0  }
   0x5   :  { %s708_s13 = smov 0   ;;  %s710_s14 = smov 0  }
   0x6 LB: > { %s484_s15 = sadd.s32 4294967295, %s680_s14   ;;  %s33_s16 = sadd.s32 1, %s676_s13  ;;  %s680_s14 = sphi %s710_s14, %s18_s14   ;;  %s676_s13 = sphi %s708_s13, %s872_s13   ;;  %s672_s12 = sphi %s706_s12, %s871_s12   ;;  %s668_s11 = sphi %s704_s11, %s870_s11   ;;  %s664_s10 = sphi %s702_s10, %s869_s10   ;;  %s660_s9 = sphi %s700_s9, %s868_s9  }
   0x7   : > { %p35_p0 = scmp.ge.s32.totalorder %s33_s16, 2  ;;  %s48_s17 = sadd.s32 1, %s668_s11 }
   0x8   : > { %p55_p1 = scmp.ne.s32.totalorder %s668_s11, %s664_s10  ;;  %p56_p2 = scmp.eq.s32.totalorder %s680_s14, 0 }
   0x9   : > { %s874_s16 = smov (%p35_p0, %s33_s16), 0  ;;  %p61_p4 = scmp.ne.s32.totalorder %s664_s10, %s660_s9 }
   0xa   : > { %p736_p3 = por %p56_p2, %p55_p1  ;;  %s43_s19 = ssub.s32 %s676_s13, %s874_s16 }
   0xb   : > { %p62_p5 = scmp.eq.s32.totalorder %s484_s15, 0  ;;  %p46_p6 = scmp.eq.s32.totalorder %s43_s19, 0 }
   0xc   : > { %p513_p8 = scmp.lt.s32.totalorder %s680_s14, 2  ;;  %s752_s22 = sand.u32 1, %s668_s11  }
   0xd   : > { %p743_p7 = por %p62_p5, %p61_p4  ;;  %s500_s23 = sshll.u32 %s676_s13, 7 }
   0xe   : > { %s749_s21 = scalar_select %p46_p6, %s668_s11, %s48_s17  }
   0xf   : > { %s488_s24 = sshll.u32 %s752_s22, 3  ;;  %s156_s27 = scalar_lea.hbm %s861_s0, %s500_s23 }
  0x10   : > { %s147_s28 = scalar_lea.vmem [#allocation2], %s488_s24  ;;  %p761_p9 = pnand %p513_p8, %p736_p3 }
  0x11   : > { %s158_s29 = sshll.u32 %s147_s28, 4  ;;  %p494_p10 = scmp.ge.s32.totalorder %s680_s14, 1  ;;  %s159_s29 = int_to_ptr.vmem [resolvable:$true] %s158_s29 }
  0x12   : > { %p185_p11 = scmp.lt.s32.totalorder %s680_s14, 3  ;;  %s144_s3 = scalar_lea.sflag [#allocation3], %s752_s22 }
  0x13   : > { %p572_p12 = pneg %p761_p9  ;;  %s583_s4 = scalar_lea.vmem %s159_s29, 128 }
  0x14   : > { %p584_p13 = scmp.ne.s32.totalorder %s159_s29, %s583_s4  ;;  %s682_s5 = smov [#allocation2]  }
  0x15   : > { %s588_s6 = sshll.u32 %s682_s5, 4  ;;  %s589_s6 = int_to_ptr.vmem [resolvable:$false] %s588_s6 }
  0x16   : > { %p586_p0 = pnand %p584_p13, %p572_p12  ;;  %s590_s7 = scalar_lea.vmem %s589_s6, 256 }
  0x17   : > { %p591_p2 = scmp.lt.s32.totalorder %s159_s29, %s589_s6  ;;  %p592_p3 = scmp.lt.s32.totalorder %s590_s7, %s583_s4 }
  0x18   : > { %p587_p1 = pneg %p586_p0 }
  0x19   : > { %p593_p4 = por %p592_p3, %p591_p2 }
  0x1b   : > { %p594_p5 = pnand %p593_p4, %p587_p1 }
  0x1d   : > { %597 = shalt.err (!%p594_p5)
}
  0x1e   : > { %509 = dma.hbm_to_vmem [thread:$0]  (!%p761_p9), %s156_s27, 128, %s159_s29, %s144_s3  }
  0x1f   : > { %p779_p6 = pnand %p494_p10, %p185_p11  ;;  %s491_s9 = sshll.u32 %s752_s22, 1 }
  0x20   : > { %s501_s15 = sshll.u32 %s676_s13, 5  ;;  %s169_s23 = scalar_lea.vmem [#allocation4], %s491_s9 }
  0x21   : > { %s178_s19 = scalar_lea.hbm %s862_s1, %s501_s15  ;;  %s180_s24 = sshll.u32 %s169_s23, 4  ;;  %s181_s24 = int_to_ptr.vmem [resolvable:$true] %s180_s24 }
  0x22   : > { %s166_s25 = scalar_lea.sflag [#allocation5], %s752_s22  ;;  %s611_s26 = scalar_lea.vmem %s181_s24, 32 }
  0x23   : > { %p612_p8 = scmp.ne.s32.totalorder %s181_s24, %s611_s26  ;;  %s683_s27 = smov [#allocation4]  }
  0x24   : > { %s616_s28 = sshll.u32 %s683_s27, 4  ;;  %s617_s28 = int_to_ptr.vmem [resolvable:$false] %s616_s28 }
  0x25   : > { %p614_p13 = pnand %p612_p8, %p572_p12  ;;  %s618_s29 = scalar_lea.vmem %s617_s28, 64 }
  0x26   : > { %p619_p10 = scmp.lt.s32.totalorder %s181_s24, %s617_s28  ;;  %p620_p11 = scmp.lt.s32.totalorder %s618_s29, %s611_s26 }
  0x27   : > { %p615_p0 = pneg %p614_p13 }
  0x28   : > { %p621_p1 = por %p620_p11, %p619_p10 }
  0x2a   : > { %p622_p2 = pnand %p621_p1, %p615_p0 }
  0x2c   : > { %625 = shalt.err (!%p622_p2)
}
  0x2d   : > { %512 = dma.hbm_to_vmem [thread:$0]  (!%p761_p9), %s178_s19, 32, %s181_s24, %s166_s25  }
  0x2e   : > { %189 = sbr.rel (%p779_p6) target bundleno = 297 (0x129), region = 28  ;;  %s191_s22 = sand.u32 (!%p779_p6), 1, %s664_s10  }
  0x2f   : > { %s495_s3 = sshll.u32 (!%p779_p6), %s191_s22, 3  ;;  %s192_s4 = scalar_lea.sflag (!%p779_p6), [#allocation3], %s191_s22 }
  0x30   : > { %s195_s5 = scalar_lea.vmem (!%p779_p6), [#allocation2], %s495_s3 }
  0x33   : > { %651 = dma.done.wait (%p743_p7), %s192_s4, 128  }
  0x34   : > { %653 = vsyncadd (%p743_p7), %s192_s4, 4294967168  ;;  %s496_s6 = sshll.u32 %s191_s22, 1  ;;  %s201_s7 = scalar_lea.sflag [#allocation5], %s191_s22 }
  0x35   : > { %s204_s9 = scalar_lea.vmem [#allocation4], %s496_s6 }
  0x36   : > { %655 = dma.done.wait (%p743_p7), %s201_s7, 32  }
  0x37   : > { %657 = vsyncadd (%p743_p7), %s201_s7, 4294967264  ;;  %v308_v0 = vlaneseq  ;;  %p239_p9 = scmp.lt.s32.totalorder %s672_s12, 1  ;;  %vm249_vm0 = vcmask 19456   ;;  %vm256_vm1 = vcmask 1043456   ;;  %v684_v4 = vmov 0.0   ;;  %v251_v5 = vld [vmem:[%s195_s5] sm:$0xff] }
  0x38   : > { %v252_v6 = vld [vmem:[%s204_s9] sm:$0x3]  ;;  %v254_v7 = vcombine.high %v251_v5, %v251_v5  ;;  %v257_v8 = vsel %vm256_vm1, %v251_v5, -inf  ;;  %vm351_vm4 = vcmask 3072   ;;  %vm355_vm5 = vcmask 11272  }
  0x39   : > { %v806_v1 = vshrl.u32 %v308_v0, 7  ;;  %s876_s12 = smov (!%p239_p9, %s672_s12), 1  ;;  %v258_v11 = vrot.slane %v257_v8, 4  ;;  %vm359_vm6 = vcmask 19472  }
  0x3a   : > { %s497_s30 = sshll.u32 %s876_s12, 2  ;;  %v264_v12 = vsel %vm256_vm1, %v254_v7, -inf }
  0x3b   : > { %v312_v2 = vsub.s32 0, %v806_v1  ;;  %v316_v3 = vsub.s32 1, %v806_v1  ;;  %s814_s17 = scalar_lea.vmem %s863_s2, %s497_s30  ;;  %v259_v13 = vmax.f32 %v257_v8, %v258_v11  ;;  %v265_v14 = vrot.slane %v264_v12, 4 }
  0x3c   : > { %250 = vst.msk [vmem:[%s814_s17] sm:$0xf] %vm249_vm0, %v684_v4 }
  0x3d   : > { %v313_v9 = vrot.slane %v252_v6, %v312_v2  ;;  %v317_v10 = vrot.slane %v252_v6, %v316_v3  ;;  %v260_v19 = vrot.slane %v259_v13, 2  ;;  %v266_v20 = vmax.f32 %v264_v12, %v265_v14 }
  0x3f   : > { %vm318_vm2 = vcmp.eq.s32.totalorder %v313_v9, %v806_v1  ;;  %vm319_vm3 = vcmp.eq.s32.totalorder %v317_v10, %v806_v1  ;;  %v261_v22 = vmax.f32 %v259_v13, %v260_v19  ;;  %v267_v23 = vrot.slane %v266_v20, 2 }
  0x40   : > { %v339_v15 = vsel %vm318_vm2, 1.0, %v684_v4  ;;  %v340_v16 = vsel %vm319_vm3, 1.0, %v684_v4 }
  0x41   : > { %v341_v17 = vsel %vm256_vm1, %v339_v15, 0.0  ;;  %v342_v18 = vsel %vm256_vm1, %v340_v16, 0.0  ;;  %v262_v24 = vrot.slane %v261_v22, 1  ;;  %v268_v25 = vmax.f32 %v266_v20, %v267_v23 }
  0x42   : > { %v343_v21 = vadd.f32 %v342_v18, %v341_v17 }
  0x43   : > { %v263_v26 = vmax.f32 %v261_v22, %v262_v24  ;;  %v269_v27 = vrot.slane %v268_v25, 1  ;;  %v349_v6 = vld [vmem:[%s814_s17] sm:$0xf] }
  0x44   : > { %344 = vadd.xlane.f32.xlu1 %v343_v21 }
  0x45   : > { %v270_v28 = vmax.f32 %v268_v25, %v269_v27 }
  0x47   : > { %v273_v29 = vcombine.low %v263_v26, %v270_v28 }
  0x49   : > { %v275_v30 = vsub.f32 %v251_v5, %v273_v29 }
  0x4b   : > { %v276_v31 = vmul.f32 1.442695, %v275_v30 }
  0x4d   : > { %564 = vpow2.f32 %v276_v31 }
  0x5a   : > { %v565_v32 = vpop.eup %564 }
  0x5b   : > { %v279_v33 = vcombine.high %v565_v32, %v565_v32  ;;  %v281_v34 = vsel %vm256_vm1, %v565_v32, 0.0 }
  0x5c   : > { %v282_v35 = vrot.slane %v281_v34, 4 }
  0x5d   : > { %v288_v36 = vsel %vm256_vm1, %v279_v33, 0.0 }
  0x5e   : > { %v283_v37 = vadd.f32 %v282_v35, %v281_v34  ;;  %v289_v38 = vrot.slane %v288_v36, 4 }
  0x60   : > { %v284_v39 = vrot.slane %v283_v37, 2  ;;  %v290_v40 = vadd.f32 %v289_v38, %v288_v36 }
  0x62   : > { %v285_v41 = vadd.f32 %v284_v39, %v283_v37  ;;  %v291_v42 = vrot.slane %v290_v40, 2 }
  0x64   : > { %v286_v43 = vrot.slane %v285_v41, 1  ;;  %v292_v44 = vadd.f32 %v291_v42, %v290_v40 }
  0x66   : > { %v287_v45 = vadd.f32 %v286_v43, %v285_v41  ;;  %v293_v46 = vrot.slane %v292_v44, 1 }
  0x68   : > { %v294_v47 = vadd.f32 %v293_v46, %v292_v44  ;;  %566 = vrcp.f32 %v287_v45 }
  0x6a   : > { %568 = vrcp.f32 %v294_v47 }
  0x75   : > { %v567_v48 = vpop.eup %566 }
  0x76   : > { %v297_v49 = vmul.f32 %v567_v48, %v287_v45 }
  0x77   : > { %v569_v50 = vpop.eup %568 }
  0x78   : > { %v298_v51 = vmul.f32 %v569_v50, %v294_v47  ;;  %v299_v52 = vsub.f32 2.0, %v297_v49 }
  0x7a   : > { %v300_v53 = vsub.f32 2.0, %v298_v51  ;;  %v301_v54 = vmul.f32 %v567_v48, %v299_v52 }
  0x7c   : > { %v302_v55 = vmul.f32 %v569_v50, %v300_v53 }
  0x7e   : > { %v305_v56 = vcombine.low %v301_v54, %v302_v55 }
  0x80   : > { %v307_v57 = vmul.f32 %v565_v32, %v305_v56 }
  0x82   : > { %v321_v58 = vcombine.high %v307_v57, %v307_v57  ;;  %v323_v59 = vsel %vm318_vm2, %v307_v57, 0.0  ;;  %v330_v60 = vmul.f32 %v307_v57, %v307_v57 }
  0x83   : > { %v325_v61 = vsel %vm256_vm1, %v323_v59, 0.0 }
  0x84   : > { %v324_v62 = vsel %vm319_vm3, %v321_v58, 0.0  ;;  %v332_v63 = vcombine.high %v330_v60, %v330_v60  ;;  %v334_v2 = vsel %vm256_vm1, %v330_v60, 0.0 }
  0x85   : > { %v326_v0 = vsel %vm256_vm1, %v324_v62, 0.0 }
  0x86   : > { %v327_v3 = vadd.f32 %v326_v0, %v325_v61  ;;  %v335_v4 = vsel %vm256_vm1, %v332_v63, 0.0 }
  0x87   : > { %v336_v5 = vadd.f32 %v335_v4, %v334_v2 }
  0x88   : > { %328 = vadd.xlane.f32.xlu0 %v327_v3 }
  0x8c   : > { %337 = vadd.xlane.f32.xlu0 %v336_v5 }
  0xcd   : > { %v345_v11 = vpop.xlane.xlu1 %344 }
 0x111   : > { %v329_v7 = vpop.xlane.xlu0 %328 }
 0x112   : > { %v350_v1 = vadd.f32 %v349_v6, %v329_v7 }
 0x114   : > { %352 = vst.msk [vmem:[%s814_s17] sm:$0xf] %vm351_vm4, %v350_v1 }
 0x115   : > { %v338_v8 = vpop.xlane.xlu0 %337 }
 0x11b   : > { %v353_v9 = vld [vmem:[%s814_s17] sm:$0xf] }
 0x11c   : > { %v354_v10 = vadd.f32 %v353_v9, %v338_v8 }
 0x11e   : > { %356 = vst.msk [vmem:[%s814_s17] sm:$0xf] %vm355_vm5, %v354_v10 }
 0x125   : > { %v357_v12 = vld [vmem:[%s814_s17] sm:$0xf] }
 0x126   : > { %v358_v13 = vadd.f32 %v357_v12, %v345_v11 }
 0x128   : > { %360 = vst.msk [vmem:[%s814_s17] sm:$0xf] %vm359_vm6, %v358_v13 }
 0x129 PF: > { %s18_s14 = sadd.s32 1, %s680_s14   ;;  %s868_s9 = smov %s664_s10 }
 0x12a   : > { %p15_p7 = scmp.ge.s32.totalorder %s18_s14, 4   ;;  %s869_s10 = smov %s668_s11 }
 0x12b   : > { %s870_s11 = smov %s749_s21  ;;  %s871_s12 = smov %s676_s13 }
 0x12c   : > { %s872_s13 = smov %s874_s16  ;;  %17 = sbr.rel (!%p15_p7) target bundleno = 6 (0x6), region = 85 }
 0x131   :  { %388 = vsyncpa [#allocation3], 1 }
 0x132   :  { %390 = vsyncpa [#allocation3 + $0x1], 1 }
 0x133   :  { %391 = vsyncpa [#allocation5], 1 }
 0x134   :  { %393 = vsyncpa [#allocation5 + $0x1], 1 }

</bundles_post_ra>
